<compile_context>
chip_gen: v7x
topology: tpu7x:2x2x1
jax: 0.10.0
libtpu: 0.0.40
codegen_flags: <defaults>
</compile_context>

<pallas_src>
import jax
import jax.numpy as jnp
from jax.experimental import pallas as pl
from jax.experimental.pallas import tpu as pltpu


def _round_up(a, m):
    return -(-a // m) * m


def _target_block_bytes():
    """Per-block input-bytes target, tuned per TPU generation."""
    try:
        kind = jax.devices()[0].device_kind.lower()
    except Exception:
        kind = ""
    if "v7" in kind:
        return 8 * 1024 * 1024   # v7x: 3.2 TB/s HBM -> big blocks to hit roofline
    if "v5" in kind:
        return 2 * 1024 * 1024   # v5e: 16 MiB default scoped VMEM, ~0.8 TB/s HBM
    return 4 * 1024 * 1024       # v6e and default


def ar_kernel(w_ref, x_ref, b_ref, o_ref):
    # w_ref: (W, 1)     VMEM  weight column (broadcast across lanes; shared block)
    # x_ref: (1, W, TV) VMEM  one batch row, W on sublanes, V-tile on lanes
    # b_ref: (1, 1)     SMEM  scalar bias
    # o_ref: (1, 1, TV) VMEM  lane-dense output tile
    x = x_ref[0].astype(jnp.float32)                 # (W, TV)
    w = w_ref[...].astype(jnp.float32)               # (W, 1) -> broadcast over lanes
    y = jnp.sum(x * w, axis=0, keepdims=True)        # VPU mul + sublane (XLU) reduce
    y = y + b_ref[0, 0]
    o_ref[0] = y.astype(o_ref.dtype)                 # (1, TV) lane-dense store


def ar_forward(x, weight, bias):
    """x: (B, 1, W, V); weight: (1, W); bias: (1,). Returns (B, 1, V)."""
    B, one, W, V = x.shape
    assert one == 1

    LANE = 128
    xb = x.reshape(B, W, V)                          # squeeze(1); no transpose

    itemsize = jnp.dtype(x.dtype).itemsize
    V128 = _round_up(V, LANE)

    # Lanes per block from the generation-aware byte target.
    target_bytes = _target_block_bytes()
    lanes_per_block = max(LANE, ((target_bytes // (W * itemsize)) // LANE) * LANE)

    num_tiles = max(1, -(-V128 // lanes_per_block))
    # Keep >= 2 grid steps when B == 1 and there is enough work (megacore / v7x).
    if B == 1 and num_tiles == 1 and V128 >= 2 * LANE:
        num_tiles = 2
    TV = _round_up(-(-V128 // num_tiles), LANE)      # even-ish tiles, bounded padding
    V_pad = num_tiles * TV

    if V_pad > V:
        xb = jnp.pad(xb, ((0, 0), (0, 0), (0, V_pad - V)))  # pad only the V axis

    w_col = weight.reshape(W, 1)
    bias2 = bias.reshape(1, 1)

    out = pl.pallas_call(
        ar_kernel,
        out_shape=jax.ShapeDtypeStruct((B, 1, V_pad), x.dtype),
        grid_spec=pltpu.PrefetchScalarGridSpec(
            num_scalar_prefetch=0,
            grid=(B, num_tiles),
            in_specs=[
                pl.BlockSpec((W, 1), lambda b, j: (0, 0)),        # weight (shared, tiny)
                pl.BlockSpec((1, W, TV), lambda b, j: (b, 0, j)),  # natural-layout x tile
                pl.BlockSpec(memory_space=pltpu.SMEM),             # bias scalar
            ],
            out_specs=pl.BlockSpec((1, 1, TV), lambda b, j: (b, 0, j)),
        ),
        compiler_params=pltpu.CompilerParams(
            dimension_semantics=("parallel", "parallel"),
            vmem_limit_bytes=32 * 1024 * 1024,
        ),
    )(w_col, xb, bias2)

    # Drop lane padding only; output already has the final (B, 1, V) layout.
    return out[:, :, :V]


def ar_reference(x, weight, bias):
    # Pure-JAX reference mirroring the PyTorch forward.
    xb = jnp.squeeze(x, 1)                           # (B, W, V)
    y = jnp.einsum("bwv,w->bv", xb, weight[0]) + bias[0]
    return y[:, None, :]                             # (B, 1, V)


if __name__ == "__main__":
    B, W, V = 2, 8, 16                               # batch=2, window=8, n_multiv=16

    key = jax.random.PRNGKey(0)
    kx, kw, kb = jax.random.split(key, 3)

    x = jax.random.normal(kx, (B, 1, W, V), dtype=jnp.float32)

    # nn.Linear(window, 1) parameters: weight (1, window), bias (1,)
    bound = 1.0 / (W ** 0.5)
    weight = jax.random.uniform(kw, (1, W), minval=-bound, maxval=bound, dtype=jnp.float32)
    bias = jax.random.uniform(kb, (1,), minval=-bound, maxval=bound, dtype=jnp.float32)

    out = ar_forward(x, weight, bias)
    out = jax.block_until_ready(out)

    ref = ar_reference(x, weight, bias)
    assert out.shape == (B, 1, V), out.shape
    assert jnp.allclose(out, ref, atol=1e-5, rtol=1e-5), "mismatch vs reference"

    print("KERNEL_OK")
</pallas_src>

<mosaic_0001>
module attributes {stable_mosaic.version = 11 : i64} {
  func.func @ar_kernel(%arg0: i32, %arg1: i32, %arg2: memref<8x1xf32, #tpu.memory_space<vmem>>, %arg3: memref<1x8x128xf32, #tpu.memory_space<vmem>>, %arg4: memref<1x1xf32, #tpu.memory_space<smem>>, %arg5: memref<1x1x128xf32, #tpu.memory_space<vmem>>) attributes {dimension_semantics = [#tpu.dimension_semantics<parallel>, #tpu.dimension_semantics<parallel>], iteration_bounds = array<i64: 2, 1>, scalar_prefetch = 0 : i64, scratch_operands = 0 : i64, tpu.core_type = #tpu.core_type<tc>, window_params = [{pipeline_mode = #tpu.pipeline_mode<synchronous>, transform_indices = @transform_0, window_bounds = array<i64: 8, 1>}, {transform_indices = @transform_1, window_bounds = array<i64: 1, 8, 128>}, {transform_indices = @transform_2, window_bounds = array<i64: 1, 1>}, {transform_indices = @transform_3, window_bounds = array<i64: 1, 1, 128>}]} {
    %c0 = arith.constant 0 : index
    %c0_0 = arith.constant 0 : index
    %c0_1 = arith.constant 0 : index
    %0 = vector.load %arg3[%c0, %c0_0, %c0_1] : memref<1x8x128xf32, #tpu.memory_space<vmem>>, vector<1x8x128xf32>
    %1 = vector.shape_cast %0 : vector<1x8x128xf32> to vector<8x128xf32>
    %c0_2 = arith.constant 0 : index
    %c0_3 = arith.constant 0 : index
    %2 = vector.load %arg2[%c0_2, %c0_3] : memref<8x1xf32, #tpu.memory_space<vmem>>, vector<8x1xf32>
    %3 = vector.broadcast %2 : vector<8x1xf32> to vector<8x128xf32>
    %4 = arith.mulf %1, %3 : vector<8x128xf32>
    %cst = arith.constant dense<0.000000e+00> : vector<128xf32>
    %5 = vector.multi_reduction <add>, %4, %cst [0] : vector<8x128xf32> to vector<128xf32>
    %6 = vector.shape_cast %5 : vector<128xf32> to vector<1x128xf32>
    %c0_4 = arith.constant 0 : index
    %c0_5 = arith.constant 0 : index
    %7 = memref.load %arg4[%c0_4, %c0_5] : memref<1x1xf32, #tpu.memory_space<smem>>
    %8 = vector.broadcast %7 : f32 to vector<1x128xf32>
    %9 = arith.addf %6, %8 : vector<1x128xf32>
    %c0_6 = arith.constant 0 : index
    %c0_7 = arith.constant 0 : index
    %c0_8 = arith.constant 0 : index
    %10 = vector.load %arg5[%c0_6, %c0_7, %c0_8] : memref<1x1x128xf32, #tpu.memory_space<vmem>>, vector<1x1x128xf32>
    %11 = vector.shape_cast %10 : vector<1x1x128xf32> to vector<1x128xf32>
    %12 = vector.shape_cast %9 : vector<1x128xf32> to vector<1x1x128xf32>
    tpu.vector_store %arg5[%c0_6, %c0_7, %c0_8], %12 {strides = array<i32>} : memref<1x1x128xf32, #tpu.memory_space<vmem>>, vector<1x1x128xf32>,
    return
  }
  func.func @transform_0(%arg0: i32, %arg1: i32) -> (i32, i32) {
    %c0_i32 = arith.constant 0 : i32
    %c0_i32_0 = arith.constant 0 : i32
    %c0_i32_1 = arith.constant 0 : i32
    return %c0_i32, %c0_i32_0 : i32, i32
  }
  func.func @transform_1(%arg0: i32, %arg1: i32) -> (i32, i32, i32) {
    %c0_i32 = arith.constant 0 : i32
    %c0_i32_0 = arith.constant 0 : i32
    return %arg0, %c0_i32, %arg1 : i32, i32, i32
  }
  func.func @transform_2(%arg0: i32, %arg1: i32) -> (i32, i32) {
    %c0_i32 = arith.constant 0 : i32
    %c0_i32_0 = arith.constant 0 : i32
    %c0_i32_1 = arith.constant 0 : i32
    return %c0_i32, %c0_i32_0 : i32, i32
  }
  func.func @transform_3(%arg0: i32, %arg1: i32) -> (i32, i32, i32) {
    %c0_i32 = arith.constant 0 : i32
    %c0_i32_0 = arith.constant 0 : i32
    return %arg0, %c0_i32, %arg1 : i32, i32, i32
  }
}

</mosaic_0001>

<bundles_post_ra>
// kernel: tpu_custom_call.1
= control target key start
LH: loop header
LB: loop body
LE: loop exit
PB: predicated region body
PF: predicated region fallthrough
CT: control target
= control target key end

     0   :  { %s576_s0 = inlined_call_operand.vmem [shape: f32[8,1], index: 0, kind: input, shape index: {}]   ;;  %s577_s1 = inlined_call_operand.vmem [shape: f32[2,8,128], index: 1, kind: input, shape index: {}]   ;;  %s578_s2 = inlined_call_operand.<no memory space> [shape: f32[1,1], index: 2, kind: input, shape index: {}]   ;;  %s579_s3 = inlined_call_operand.hbm [shape: f32[2,1,128], index: 3, kind: output, shape index: {}]  }
   0x1   :  { %8 = sst [smem:[#allocation2]] %s578_s2 }
   0x2   :  { %9 = vsyncpa [#allocation4], 0 }
   0x3   :  { %11 = vsyncpa [#allocation4 + $0x1], 0  ;;  %s461_s14 = smov 0   ;;  %s463_s15 = smov 0  }
   0x4   :  { %s465_s16 = smov 0   ;;  %s467_s17 = smov 0  }
   0x5   :  { %s469_s18 = smov 0   ;;  %s471_s19 = smov 0  }
   0x6 LB: > { %s290_s2 = sadd.s32 4294967295, %s434_s19   ;;  %s291_s20 = sadd.s32 4294967294, %s434_s19   ;;  %s434_s19 = sphi %s471_s19, %s17_s19   ;;  %s430_s18 = sphi %s469_s18, %s586_s18   ;;  %s426_s17 = sphi %s467_s17, %s585_s17   ;;  %s422_s16 = sphi %s465_s16, %s584_s16   ;;  %s418_s15 = sphi %s463_s15, %s583_s15   ;;  %s414_s14 = sphi %s461_s14, %s582_s14  }
   0x7   : > { %s29_s21 = sadd.s32 1, %s430_s18  ;;  %s108_s22 = sadd.s32 1, %s422_s16 }
   0x8   : > { %p31_p0 = scmp.ge.s32.totalorder %s29_s21, 2  ;;  %p118_p1 = scmp.ne.s32.totalorder %s422_s16, %s418_s15 }
   0x9   : > { %p119_p2 = scmp.eq.s32.totalorder %s290_s2, 1  ;;  %p124_p3 = scmp.ne.s32.totalorder %s418_s15, %s414_s14 }
   0xa   : > { %s588_s21 = smov (%p31_p0, %s29_s21), 0  ;;  %p125_p5 = scmp.eq.s32.totalorder %s291_s20, 1 }
   0xb   : > { %p501_p4 = por %p119_p2, %p118_p1  ;;  %s103_s24 = ssub.s32 %s430_s18, %s588_s21 }
   0xc   : > { %p294_p6 = scmp.ge.s32.totalorder %s434_s19, 1  ;;  %p106_p7 = scmp.eq.s32.totalorder %s103_s24, 0 }
   0xd   : > { %p508_p8 = por %p125_p5, %p124_p3  ;;  %p159_p9 = scmp.lt.s32.totalorder %s434_s19, 3 }
   0xe   : > { %s514_s26 = scalar_select %p106_p7, %s422_s16, %s108_s22  }
   0xf   : > { %p160_p10 = pnand %p294_p6, %p159_p9 }
  0x10   : > { %v192_v0 = vld [vmem:[%s576_s0] sm:$0xff] (!%p160_p10)  ;;  %v436_v1 = vmov (!%p160_p10), 0   ;;  %p184_p11 = scmp.lt.s32.totalorder (!%p160_p10), %s426_s17, 1  ;;  %s205_s7 = sld [smem:[#allocation2]] (!%p160_p10) }
  0x11   : > { %163 = sbr.rel (%p160_p10) target bundleno = 176 (0xb0), region = 32  ;;  %355 = vset.pattern.permute.xlu0 (!%p160_p10), %v436_v1  ;;  %s182_s8 = sand.u32 (!%p160_p10), 1, %s418_s15  }
  0x12   : > { %195 = vperm.xlu0 (!%p160_p10), %355, %v192_v0   ;;  %s296_s9 = sshll.u32 (!%p160_p10), %s426_s17, 4  ;;  %s183_s10 = scalar_lea.vmem (!%p160_p10), [#allocation3], %s182_s8 }
  0x13   : > { %s223_s11 = sshll.u32 (!%p160_p10), %s183_s10, 4  ;;  %s529_s2 = scalar_lea.hbm (!%p160_p10), %s579_s3, %s296_s9  ;;  %s531_s11 = int_to_ptr.vmem [resolvable:$true] %s223_s11 }
  0x14   : > { %s210_s20 = scalar_lea.sflag (!%p160_p10), [#allocation4], %s182_s8  ;;  %s356_s22 = scalar_lea.vmem (!%p160_p10), %s531_s11, 16 }
  0x15   : > { %p357_p12 = scmp.ne.s32.totalorder (!%p160_p10), %s531_s11, %s356_s22 }
  0x16   : > { %v206_v10 = vstv (!%p160_p10), %s205_s7 }
  0x17   : > { %p358_p13 = pnand (!%p160_p10), %p357_p12, %p501_p4 }
  0x18   : > { %s185_s29 = scalar_select %p184_p11, %s426_s17, 1 }
  0x19   : > { %p359_p0 = pneg %p358_p13  ;;  %s437_s17 = smov [#allocation3]  }
  0x1a   : > { %s295_s30 = sshll.u32 %s185_s29, 3  ;;  %s360_s24 = sshll.u32 %s437_s17, 4  ;;  %s361_s24 = int_to_ptr.vmem [resolvable:$false] %s360_s24 }
  0x1b   : > { %s190_s6 = scalar_lea.vmem %s577_s1, %s295_s30  ;;  %s362_s27 = scalar_lea.vmem %s361_s24, 32 }
  0x1c   : > { %v191_v2 = vld [vmem:[%s190_s6] sm:$0xff]  ;;  %p363_p1 = scmp.lt.s32.totalorder %s531_s11, %s361_s24  ;;  %p364_p2 = scmp.lt.s32.totalorder %s362_s27, %s356_s22 }
  0x1e   : > { %p365_p3 = por %p364_p2, %p363_p1 }
  0x20   : > { %p366_p5 = pnand %p365_p3, %p359_p0 }
  0x91   : > { %v196_v3 = vpop.permute.xlu0 %195 }
  0x92   : > { %v198_v4 = vmul.f32 %v196_v3, %v191_v2 }
  0x94   : > { %v199_v5 = vrot.slane %v198_v4, 4 }
  0x96   : > { %v200_v6 = vadd.f32 %v199_v5, %v198_v4 }
  0x98   : > { %v201_v7 = vrot.slane %v200_v6, 2 }
  0x9a   : > { %v202_v8 = vadd.f32 %v201_v7, %v200_v6 }
  0x9c   : > { %v203_v9 = vrot.slane %v202_v8, 1 }
  0x9e   : > { %v204_v11 = vadd.f32 %v203_v9, %v202_v8 }
  0xa0   : > { %v207_v12 = vadd.f32 %v206_v10, %v204_v11 }
  0xa2   : > { %208 = vst [vmem:[%s183_s10] sm:$0x1] %v207_v12 }
  0xa3   : > { %369 = shalt.err (!%p366_p5)
}
  0xa4   : > { %s370_s28 = scalar_lea.hbm %s529_s2, 16  ;;  %s374_s4 = scalar_lea.hbm %s579_s3, 32 }
  0xa5   : > { %p371_p6 = scmp.ne.s32.totalorder %s529_s2, %s370_s28  ;;  %p375_p10 = scmp.lt.u32.totalorder %s529_s2, %s579_s3 }
  0xa6   : > { %p376_p11 = scmp.lt.u32.totalorder %s374_s4, %s370_s28  ;;  %p378_p13 = scmp.lt.u32.totalorder %s370_s28, %s529_s2 }
  0xa7   : > { %p372_p7 = pnand %p371_p6, %p501_p4 }
  0xa8   : > { %p377_p12 = por %p376_p11, %p375_p10 }
  0xa9   : > { %p373_p9 = pneg %p372_p7 }
  0xaa   : > { %p379_p0 = por %p378_p13, %p377_p12 }
  0xac   : > { %p380_p1 = pnand %p379_p0, %p373_p9 }
  0xae   : > { %383 = shalt.err (!%p380_p1)
}
  0xaf   : > { %299 = dma.vmem_to_hbm [thread:$0]  (%p501_p4), %s531_s11, 16, %s529_s2, %s210_s20  }
  0xb0 PF: > { %p305_p2 = scmp.ge.s32.totalorder %s434_s19, 2  ;;  %s235_s7 = sand.u32 1, %s414_s14  }
  0xb1   : > { %s236_s8 = scalar_lea.sflag [#allocation4], %s235_s7 }
  0xb2   : > { %p302_p3 = pnand %p305_p2, %p508_p8 }
  0xb4   : > { %409 = dma.done.wait (!%p302_p3), %s236_s8, 16  }
  0xb5   : > { %411 = vsyncadd (!%p302_p3), %s236_s8, 4294967280  ;;  %s17_s19 = sadd.s32 1, %s434_s19   ;;  %s582_s14 = smov %s418_s15 }
  0xb6   : > { %p14_p5 = scmp.ge.s32.totalorder %s17_s19, 4   ;;  %s583_s15 = smov %s422_s16 }
  0xb7   : > { %s584_s16 = smov %s514_s26  ;;  %s585_s17 = smov %s430_s18 }
  0xb8   : > { %s586_s18 = smov %s588_s21  ;;  %16 = sbr.rel (!%p14_p5) target bundleno = 6 (0x6), region = 67 }
  0xbf   :  { %240 = vsyncpa [#allocation4], 1 }
  0xc0   :  { %242 = vsyncpa [#allocation4 + $0x1], 1 }

</bundles_post_ra>
